<compile_context>
chip_gen: v5e
topology: v5e:2x2
jax: 0.10.0
libtpu: 0.0.40
codegen_flags: <defaults>
</compile_context>

<pallas_src>
import functools
import math

import jax
import jax.numpy as jnp
from jax.experimental import pallas as pl
from jax.experimental.pallas import tpu as pltpu


def _pick_tile(total: int, cap: int, align: int) -> int:
    """Largest `align`-multiple tile <= cap that divides `total` exactly; falls back
    to the full extent (a full-extent block is always a legal block size)."""
    if total <= cap:
        return total
    t = (cap // align) * align
    while t >= align:
        if total % t == 0:
            return t
        t -= align
    # TODO(synk): for huge prime-ish extents, use a capped tile with a ragged last
    # block (Pallas clips OOB writes; rows are independent so OOB reads are harmless).
    return total


def _emb_pe_kernel(x_ref, w_ref, b_ref, o_ref, *, seq_len, d_model, tm, tn):
    # x_ref : (TM, d_in)   rows of the flattened (B*L) activation
    # w_ref : (d_in, TN)   weight tile  (resident across all inner m steps)
    # b_ref : (1, TN)      bias tile    (resident across all inner m steps)
    # o_ref : (TM, TN)
    n = pl.program_id(0)
    m = pl.program_id(1)

    # ---- MXU: x @ W with f32 accumulation ----
    y = jnp.dot(x_ref[...], w_ref[...], preferred_element_type=jnp.float32)

    # ---- VPU/EUP: sinusoidal positional encoding generated in-kernel ----
    row = jax.lax.broadcasted_iota(jnp.int32, (tm, tn), 0) + m * tm   # global flat row
    col = jax.lax.broadcasted_iota(jnp.int32, (tm, tn), 1) + n * tn   # global column
    pos = (row % seq_len).astype(jnp.float32)                        # within-sequence pos
    # Module semantics: exponent is the column index itself for both the sin (even
    # columns) and cos (odd columns) terms:  angle = pos / 10000**(col / d_model).
    ang = pos * jnp.exp(col.astype(jnp.float32) * (-math.log(10000.0) / d_model))
    pe = jnp.where((col & 1) == 0, jnp.sin(ang), jnp.cos(ang))

    o_ref[...] = y + pe + b_ref[...]


def embedding_position_encoding(x, w_t, bias):
    """x:(B,L,d_in) f32, w_t:(d_in,d_model) f32, bias:(d_model,) f32 -> (B,L,d_model) f32."""
    B, L, d_in = x.shape
    d_model = w_t.shape[1]
    M = B * L

    # Flatten (B, L) -> M (free, contiguous collapse) and keep bias 2-D for VMEM.
    x2 = x.reshape(M, d_in)
    bias2 = bias.reshape(1, d_model)

    # Hardware-aligned tiles that divide exactly -> no host pad, no output slice.
    TM = _pick_tile(M, 512, 8)          # sublane-aligned row tile
    TN = _pick_tile(d_model, 512, 128)  # lane-dense output stores when d_model >= 128
    m_tiles = M // TM
    n_tiles = d_model // TN

    # Deterministic VMEM budget: double-buffered x/out tiles + W/bias tiles, 2x margin.
    working = 4 * (2 * TM * d_in + 2 * d_in * TN + 2 * TM * TN + 2 * TN)
    vmem_limit = int(min(64 * 2**20, max(2 * working, 8 * 2**20)))

    # TODO(synk): for large d_in, tile K with a trailing "arbitrary" grid axis and an
    # f32 VMEM accumulator (pl.when init/finalize) so the full (d_in, TN) weight tile
    # never has to be resident (v7x has only 64 MiB physical VMEM).
    # TODO(synk): if the downstream consumer tolerates bf16, cast x/W tiles to bf16 for
    # the MXU (keep f32 accumulation) to halve HBM read bytes; kept f32 here to match
    # the PyTorch module's numerics.
    # TODO(synk): pipeline_mode=pl.Buffered(1) on the W/bias specs would halve their
    # VMEM footprint (their block index only changes on the outermost grid axis).

    kernel = functools.partial(
        _emb_pe_kernel, seq_len=L, d_model=d_model, tm=TM, tn=TN)

    out2 = pl.pallas_call(
        kernel,
        out_shape=jax.ShapeDtypeStruct((M, d_model), jnp.float32),
        grid=(n_tiles, m_tiles),   # n outermost -> W/bias resident across all m steps
        in_specs=[
            pl.BlockSpec((TM, d_in), lambda n, m: (m, 0)),
            pl.BlockSpec((d_in, TN), lambda n, m: (0, n)),
            pl.BlockSpec((1, TN), lambda n, m: (0, n)),
        ],
        out_specs=pl.BlockSpec((TM, TN), lambda n, m: (m, n)),
        compiler_params=pltpu.CompilerParams(
            dimension_semantics=("parallel", "parallel"),
            vmem_limit_bytes=vmem_limit),
    )(x2, w_t, bias2)

    return out2.reshape(B, L, d_model)


def position_encoding(length: int, d_model: int) -> jnp.ndarray:
    """Exact reproduction of the PyTorch _position_encoding (the cos term uses
    10000**(odd_index / d_model), matching the module)."""
    position = jnp.arange(length, dtype=jnp.float32)[:, None]
    even_idx = jnp.arange(0, d_model, 2, dtype=jnp.float32)
    odd_idx = jnp.arange(1, d_model, 2, dtype=jnp.float32)
    sin_part = jnp.sin(position / jnp.power(10000.0, even_idx / d_model))
    cos_part = jnp.cos(position / jnp.power(10000.0, odd_idx / d_model))
    enc = jnp.zeros((length, d_model), dtype=jnp.float32)
    enc = enc.at[:, 0::2].set(sin_part)
    enc = enc.at[:, 1::2].set(cos_part)
    return enc


if __name__ == "__main__":
    # Small, module-consistent shapes.
    B, L, d_in, d_model = 2, 8, 16, 32

    key = jax.random.PRNGKey(0)
    kx, kw, kb = jax.random.split(key, 3)

    # nn.Linear-style init: U[-1/sqrt(d_in), 1/sqrt(d_in)].
    bound = 1.0 / math.sqrt(d_in)
    w = jax.random.uniform(kw, (d_model, d_in), jnp.float32, -bound, bound)  # PyTorch layout
    bias = jax.random.uniform(kb, (d_model,), jnp.float32, -bound, bound)
    w_t = w.T                                                                # (d_in, d_model)

    x = jax.random.normal(kx, (B, L, d_in), dtype=jnp.float32)

    out = embedding_position_encoding(x, w_t, bias)
    out = jax.block_until_ready(out)

    # Pure-JAX reference check (same formula as the PyTorch module).
    ref = (jnp.einsum("bld,dm->blm", x, w_t)
           + bias[None, None, :]
           + position_encoding(L, d_model)[None, :, :])
    assert out.shape == (B, L, d_model)
    assert jnp.allclose(out, ref, atol=1e-4, rtol=1e-4), float(jnp.max(jnp.abs(out - ref)))

    print("KERNEL_OK")
</pallas_src>

<mosaic_0001>
module attributes {stable_mosaic.version = 11 : i64} {
  func.func @_emb_pe_kernel(%arg0: i32, %arg1: i32, %arg2: memref<16x16xf32, #tpu.memory_space<vmem>>, %arg3: memref<16x32xf32, #tpu.memory_space<vmem>>, %arg4: memref<1x32xf32, #tpu.memory_space<vmem>>, %arg5: memref<16x32xf32, #tpu.memory_space<vmem>>) attributes {dimension_semantics = [#tpu.dimension_semantics<parallel>, #tpu.dimension_semantics<parallel>], iteration_bounds = array<i64: 1, 1>, scalar_prefetch = 0 : i64, scratch_operands = 0 : i64, tpu.core_type = #tpu.core_type<tc>, window_params = [{transform_indices = @transform_0, window_bounds = array<i64: 16, 16>}, {transform_indices = @transform_1, window_bounds = array<i64: 16, 32>}, {transform_indices = @transform_2, window_bounds = array<i64: 1, 32>}, {transform_indices = @transform_3, window_bounds = array<i64: 16, 32>}]} {
    %c0 = arith.constant 0 : index
    %c0_0 = arith.constant 0 : index
    %0 = vector.load %arg2[%c0, %c0_0] : memref<16x16xf32, #tpu.memory_space<vmem>>, vector<16x16xf32>
    %c0_1 = arith.constant 0 : index
    %c0_2 = arith.constant 0 : index
    %1 = vector.load %arg3[%c0_1, %c0_2] : memref<16x32xf32, #tpu.memory_space<vmem>>, vector<16x32xf32>
    %cst = arith.constant dense<0.000000e+00> : vector<16x32xf32>
    %2 = tpu.matmul %0, %1, %cst {dimension_numbers = #tpu.dot_dimension_numbers<[1], [0], [0], [1], [0, 0, 1, 1], [], []>} : vector<16x16xf32>, vector<16x32xf32>, vector<16x32xf32> -> vector<16x32xf32>
    %3 = tpu.iota {dimensions = array<i32: 0>} : vector<16x32xi32>
    %c16_i32 = arith.constant 16 : i32
    %4 = arith.muli %arg1, %c16_i32 : i32
    %5 = vector.broadcast %4 : i32 to vector<16x32xi32>
    %6 = arith.addi %3, %5 : vector<16x32xi32>
    %7 = tpu.iota {dimensions = array<i32: 1>} : vector<16x32xi32>
    %c32_i32 = arith.constant 32 : i32
    %8 = arith.muli %arg0, %c32_i32 : i32
    %9 = vector.broadcast %8 : i32 to vector<16x32xi32>
    %10 = arith.addi %7, %9 : vector<16x32xi32>
    %c8_i32 = arith.constant 8 : i32
    %c0_i32 = arith.constant 0 : i32
    %11 = arith.cmpi eq, %c8_i32, %c0_i32 : i32
    %c1_i32 = arith.constant 1 : i32
    %12 = arith.select %11, %c1_i32, %c8_i32 : i32
    %13 = vector.broadcast %12 : i32 to vector<16x32xi32>
    %14 = arith.remsi %6, %13 : vector<16x32xi32>
    %c0_i32_3 = arith.constant 0 : i32
    %15 = vector.broadcast %c0_i32_3 : i32 to vector<16x32xi32>
    %16 = arith.cmpi ne, %14, %15 : vector<16x32xi32>
    %c0_i32_4 = arith.constant 0 : i32
    %17 = vector.broadcast %c0_i32_4 : i32 to vector<16x32xi32>
    %18 = arith.cmpi slt, %14, %17 : vector<16x32xi32>
    %c0_i32_5 = arith.constant 0 : i32
    %19 = arith.cmpi slt, %12, %c0_i32_5 : i32
    %20 = vector.broadcast %19 : i1 to vector<16x32xi1>
    %21 = vector.broadcast %20 : vector<16x32xi1> to vector<16x32xi1>
    %22 = arith.xori %18, %21 : vector<16x32xi1>
    %23 = arith.andi %22, %16 : vector<16x32xi1>
    %24 = vector.broadcast %12 : i32 to vector<16x32xi32>
    %25 = arith.addi %14, %24 : vector<16x32xi32>
    %26 = arith.select %23, %25, %14 : vector<16x32xi1>, vector<16x32xi32>
    %27 = arith.sitofp %26 : vector<16x32xi32> to vector<16x32xf32>
    %28 = arith.sitofp %10 : vector<16x32xi32> to vector<16x32xf32>
    %cst_6 = arith.constant -0.287823141 : f32
    %29 = vector.broadcast %cst_6 : f32 to vector<16x32xf32>
    %30 = arith.mulf %28, %29 : vector<16x32xf32>
    %31 = math.exp %30 : vector<16x32xf32>
    %32 = arith.mulf %27, %31 : vector<16x32xf32>
    %c1_i32_7 = arith.constant 1 : i32
    %33 = vector.broadcast %c1_i32_7 : i32 to vector<16x32xi32>
    %34 = arith.andi %10, %33 : vector<16x32xi32>
    %c0_i32_8 = arith.constant 0 : i32
    %35 = vector.broadcast %c0_i32_8 : i32 to vector<16x32xi32>
    %36 = arith.cmpi eq, %34, %35 : vector<16x32xi32>
    %37 = math.sin %32 : vector<16x32xf32>
    %38 = math.cos %32 : vector<16x32xf32>
    %39 = arith.select %36, %37, %38 : vector<16x32xi1>, vector<16x32xf32>
    %40 = arith.addf %2, %39 : vector<16x32xf32>
    %c0_9 = arith.constant 0 : index
    %c0_10 = arith.constant 0 : index
    %41 = vector.load %arg4[%c0_9, %c0_10] : memref<1x32xf32, #tpu.memory_space<vmem>>, vector<1x32xf32>
    %42 = vector.broadcast %41 : vector<1x32xf32> to vector<16x32xf32>
    %43 = arith.addf %40, %42 : vector<16x32xf32>
    %c0_11 = arith.constant 0 : index
    %c0_12 = arith.constant 0 : index
    %44 = vector.load %arg5[%c0_11, %c0_12] : memref<16x32xf32, #tpu.memory_space<vmem>>, vector<16x32xf32>
    tpu.vector_store %arg5[%c0_11, %c0_12], %43 {strides = array<i32>} : memref<16x32xf32, #tpu.memory_space<vmem>>, vector<16x32xf32>,
    return
  }
  func.func @transform_0(%arg0: i32, %arg1: i32) -> (i32, i32) {
    %c0_i32 = arith.constant 0 : i32
    %c0_i32_0 = arith.constant 0 : i32
    return %arg1, %c0_i32 : i32, i32
  }
  func.func @transform_1(%arg0: i32, %arg1: i32) -> (i32, i32) {
    %c0_i32 = arith.constant 0 : i32
    %c0_i32_0 = arith.constant 0 : i32
    return %c0_i32, %arg0 : i32, i32
  }
  func.func @transform_2(%arg0: i32, %arg1: i32) -> (i32, i32) {
    %c0_i32 = arith.constant 0 : i32
    %c0_i32_0 = arith.constant 0 : i32
    return %c0_i32, %arg0 : i32, i32
  }
  func.func @transform_3(%arg0: i32, %arg1: i32) -> (i32, i32) {
    %c0_i32 = arith.constant 0 : i32
    return %arg1, %arg0 : i32, i32
  }
}

</mosaic_0001>

<bundles_post_ra>
// kernel: tpu_custom_call.1
= control target key start
LH: loop header
LB: loop body
LE: loop exit
PB: predicated region body
PF: predicated region fallthrough
CT: control target
= control target key end

     0   :  { %8 = vsyncpa [#allocation3], 0  ;;  %s1114_s0 = inlined_call_operand.hbm [shape: f32[16,16], index: 0, kind: input, shape index: {}]   ;;  %s1115_s1 = inlined_call_operand.hbm [shape: f32[16,32], index: 1, kind: input, shape index: {}]   ;;  %s1116_s2 = inlined_call_operand.vmem [shape: f32[1,32], index: 2, kind: input, shape index: {}]   ;;  %s1117_s3 = inlined_call_operand.hbm [shape: f32[16,32], index: 3, kind: output, shape index: {}]  }
   0x1   :  { %9 = vsyncpa [#allocation6], 0 }
   0x2   :  { %10 = vsyncpa [#allocation4], 0  ;;  %s15_s14 = sshll.u32 %s1114_s0, 4  ;;  %s885_s15 = smov [#allocation2]   ;;  %s16_s14 = int_to_ptr.hbm [resolvable:$true] %s15_s14 }
   0x3   :  { %s17_s16 = sshll.u32 %s885_s15, 4  ;;  %s28_s19 = sshll.u32 %s1115_s1, 4  ;;  %s18_s16 = int_to_ptr.vmem [resolvable:$true] %s17_s16  ;;  %s29_s19 = int_to_ptr.hbm [resolvable:$true] %s28_s19 }
   0x4   :  { %s886_s20 = smov 128   ;;  %s887_s21 = smov 8  }
   0x5   :  { %23 = dma.hbm_to_vmem [thread:$0]  %s16_s14, 256, %s18_s16, [#allocation3], %s886_s20, %s886_s20, %s887_s21  }
   0x6   :  { %s888_s22 = smov [#allocation5]  }
   0x7   :  { %s30_s23 = sshll.u32 %s888_s22, 4  ;;  %s31_s23 = int_to_ptr.vmem [resolvable:$true] %s30_s23 }
   0x8   :  { %36 = dma.hbm_to_vmem [thread:$0]  %s29_s19, 256, %s31_s23, [#allocation6], %s886_s20, %s886_s20, %s887_s21  }
   0x9   :  { %879 = dma.done.wait [#allocation3], 256  }
   0xa   :  { %880 = vsyncadd [#allocation3], 4294967040 }
   0xb   :  { %881 = dma.done.wait [#allocation6], 256  }
   0xc   :  { %882 = vsyncadd [#allocation6], 4294967040  ;;  %v51_v0 = vlaneseq  ;;  %v50_v6 = vld [vmem:[#allocation5 + $0x8] sm:$0xff]  ;;  %v49_v7 = vld [vmem:[#allocation5] sm:$0xff]  ;;  %vm717_vm0 = vcmask 130048   ;;  %s896_s24 = smov [#allocation7]  }
   0xd   :  { %738 = vmatpush.msra.mxu0 %v50_v6  ;;  %790 = vmatpush.msra.mxu1 %v50_v6  ;;  %v47_v8 = vld [vmem:[#allocation2] sm:$0xff]  ;;  %v48_v9 = vld [vmem:[#allocation2 + $0x8] sm:$0xff]  ;;  %v889_v39 = vmov 683565275   ;;  %v890_v41 = vmov 2475754826  }
   0xe   :  { %v52_v1 = vshrl.u32 %v51_v0, 7  ;;  %v929_v2 = vand.u32 127, %v51_v0  ;;  %v891_v43 = vmov 2131351028   ;;  %v892_v45 = vmov 2102212464  }
   0xf   :  { %739 = vmatpush.msra.mxu0 %v49_v7  ;;  %791 = vmatpush.msra.mxu1 %v49_v7  ;;  %v893_v47 = vmov 920167782   ;;  %v894_v56 = vmov 1326507024   ;;  %s760_s25 = sshll.u32 %s896_s24, 4  ;;  %s762_s28 = sshll.u32 %s1117_s3, 4  ;;  %s761_s25 = int_to_ptr.vmem [resolvable:$true] %s760_s25  ;;  %s763_s28 = int_to_ptr.hbm [resolvable:$true] %s762_s28 }
  0x10   :  { %v89_v3 = vcvt.s32.f32 %v929_v2  ;;  %v53_v4 = vadd.s32 8, %v52_v1  ;;  %v67_v11 = vand.u32 7, %v52_v1  ;;  %788 = vmatmul.msk.f32.vlgmr.msra.gmra.mxu0 %vm717_vm0, %v47_v8  ;;  %789 = vmatmul.msk.f32.vlgmr.msra.gmra.mxu1 %vm717_vm0, %v48_v9 }
  0x12   :  { %v90_v5 = vmul.f32 -0.28782314, %v89_v3  ;;  %v74_v12 = vand.u32 7, %v53_v4  ;;  %v87_v13 = vcvt.s32.f32 %v67_v11 }
  0x14   :  { %v91_v10 = vmul.f32 1.442695, %v90_v5  ;;  %v88_v14 = vcvt.s32.f32 %v74_v12 }
  0x16   :  { %805 = vpow2.f32 %v91_v10 }
  0x1c   :  { %v806_v15 = vpop.eup %805 }
  0x1d   :  { %v932_v16 = vmul.f32 %v806_v15, %v87_v13  ;;  %v934_v17 = vmul.f32 %v806_v15, %v88_v14 }
  0x1f   :  { %v97_v18 = vand.u32 2147483647, %v932_v16  ;;  %v100_v19 = vand.u32 2139095040, %v932_v16  ;;  %v255_v20 = vand.u32 2139095040, %v934_v17  ;;  %v252_v24 = vand.u32 2147483647, %v934_v17 }
  0x21   :  { %v101_v21 = vshrl.u32 %v100_v19, 23  ;;  %v104_v22 = vand.u32 8388607, %v97_v18  ;;  %v256_v23 = vshrl.u32 %v255_v20, 23  ;;  %v259_v30 = vand.u32 8388607, %v252_v24 }
  0x23   :  { %v776_v25 = vadd.s32 4294967169, %v101_v21  ;;  %v779_v26 = vadd.s32 4294967169, %v256_v23  ;;  %v105_v27 = vor.u32 8388608, %v104_v22  ;;  %v260_v35 = vor.u32 8388608, %v259_v30 }
  0x25   :  { %v107_v28 = vadd.s32 1, %v776_v25  ;;  %v262_v29 = vadd.s32 1, %v779_v26  ;;  %v944_v32 = vshll.u32 %v105_v27, 8  ;;  %v956_v54 = vshll.u32 %v260_v35, 8 }
  0x27   :  { %vm108_vm1 = vcmp.gt.s32.totalorder %v107_v28, 0  ;;  %vm263_vm2 = vcmp.gt.s32.totalorder %v262_v29, 0  ;;  %v146_v49 = vand.u32 65535, %v944_v32  ;;  %v147_v50 = vshrl.u32 %v944_v32, 16 }
  0x28   :  { %v109_v31 = vsel %vm108_vm1, %v107_v28, 0  ;;  %v264_v33 = vsel %vm263_vm2, %v262_v29, 0 }
  0x29   :  { %v111_v34 = vand.u32 31, %v109_v31  ;;  %v946_v36 = vshrl.u32 %v109_v31, 5  ;;  %v948_v37 = vand.u32 31, %v264_v33  ;;  %v993_v19 = vshrl.u32 %v264_v33, 5 }
  0x2b   :  { %v112_v38 = vsub.s32 32, %v111_v34  ;;  %v114_v40 = vshll.u32 %v889_v39, %v111_v34  ;;  %v117_v42 = vshll.u32 %v890_v41, %v111_v34  ;;  %v120_v44 = vshll.u32 %v891_v43, %v111_v34 }
  0x2c   :  { %v123_v46 = vshll.u32 %v892_v45, %v111_v34  ;;  %v126_v48 = vshll.u32 %v893_v47, %v111_v34  ;;  %vm129_vm3 = vcmp.lt.s32.totalorder %v946_v36, 1  ;;  %vm132_vm4 = vcmp.lt.s32.totalorder %v946_v36, 4 }
  0x2d   :  { %v115_v51 = vshrl.u32 %v890_v41, %v112_v38  ;;  %v118_v52 = vshrl.u32 %v891_v43, %v112_v38  ;;  %v121_v53 = vshrl.u32 %v892_v45, %v112_v38  ;;  %v124_v55 = vshrl.u32 %v893_v47, %v112_v38 }
  0x2e   :  { %v127_v57 = vshrl.u32 %v894_v56, %v112_v38  ;;  %v963_v61 = vsub.s32 32, %v948_v37  ;;  %v113_v62 = vshrl.u32 %v889_v39, %v112_v38  ;;  %vm131_vm5 = vcmp.lt.s32.totalorder %v946_v36, 3 }
  0x2f   :  { %v116_v58 = vor.u32 %v115_v51, %v114_v40  ;;  %v119_v59 = vor.u32 %v118_v52, %v117_v42  ;;  %v122_v60 = vor.u32 %v121_v53, %v120_v44  ;;  %v125_v63 = vor.u32 %v124_v55, %v123_v46 }
  0x30   :  { %v128_v0 = vor.u32 %v127_v57, %v126_v48  ;;  %vm130_vm6 = vcmp.lt.s32.totalorder %v946_v36, 2  ;;  %v269_v4 = vshll.u32 %v889_v39, %v948_v37  ;;  %v270_v7 = vshrl.u32 %v890_v41, %v963_v61 }
  0x31   :  { %v137_v1 = vsel %vm129_vm3, %v116_v58, %v119_v59  ;;  %v141_v3 = vsel %vm129_vm3, %v119_v59, %v122_v60  ;;  %v138_v5 = vsel %vm132_vm4, %v125_v63, 920167782  ;;  %v272_v8 = vshll.u32 %v890_v41, %v948_v37 }
  0x32   :  { %v142_v6 = vsel %vm132_vm4, %v128_v0, 1326507024  ;;  %v134_v9 = vsel %vm132_vm4, %v122_v60, 2102212464  ;;  %v139_v10 = vsel %vm131_vm5, %v122_v60, %v138_v5  ;;  %v273_v12 = vshrl.u32 %v891_v43, %v963_v61 }
  0x33   :  { %v143_v11 = vsel %vm131_vm5, %v125_v63, %v142_v6  ;;  %v133_v13 = vsel %vm129_vm3, %v113_v62, %v116_v58  ;;  %v140_v14 = vsel %vm130_vm6, %v137_v1, %v139_v10  ;;  %v135_v25 = vsel %vm131_vm5, %v119_v59, %v134_v9 }
  0x34   :  { %v144_v15 = vsel %vm130_vm6, %v141_v3, %v143_v11  ;;  %v170_v22 = vand.u32 65535, %v140_v14  ;;  %v171_v23 = vshrl.u32 %v140_v14, 16  ;;  %v997_v26 = vor.u32 %v270_v7, %v269_v4 }
  0x35   :  { %v148_v20 = vand.u32 65535, %v144_v15  ;;  %v149_v21 = vshrl.u32 %v144_v15, 16  ;;  %v999_v27 = vor.u32 %v273_v12, %v272_v8  ;;  %v275_v28 = vshll.u32 %v891_v43, %v948_v37 }
  0x36   :  { %v276_v33 = vshrl.u32 %v892_v45, %v963_v61  ;;  %v172_v35 = vmul.u32 %v170_v22, %v146_v49  ;;  %v173_v38 = vmul.u32 %v171_v23, %v146_v49  ;;  %v174_v40 = vmul.u32 %v170_v22, %v147_v50 }
  0x37   :  { %v150_v29 = vmul.u32 %v148_v20, %v146_v49  ;;  %v151_v30 = vmul.u32 %v149_v21, %v146_v49  ;;  %v152_v31 = vmul.u32 %v148_v20, %v147_v50  ;;  %v153_v34 = vmul.u32 %v149_v21, %v147_v50 }
  0x38   :  { %v175_v46 = vmul.u32 %v171_v23, %v147_v50  ;;  %v176_v51 = vshll.u32 %v173_v38, 16  ;;  %v177_v52 = vshrl.u32 %v173_v38, 16  ;;  %v178_v53 = vshll.u32 %v174_v40, 16 }
  0x39   :  { %v154_v41 = vshll.u32 %v151_v30, 16  ;;  %v155_v42 = vshrl.u32 %v151_v30, 16  ;;  %v156_v44 = vshll.u32 %v152_v31, 16  ;;  %v157_v48 = vshrl.u32 %v152_v31, 16 }
  0x3a   :  { %v179_v55 = vshrl.u32 %v174_v40, 16  ;;  %v278_v57 = vshll.u32 %v892_v45, %v948_v37  ;;  %v895_v58 = vmov 0   ;;  %vm180_vm8 = vc.u32 %v172_v35, %v176_v51 }
  0x3b   :  { %vm158_vm7 = vc.u32 %v150_v29, %v154_v41  ;;  %v160_v43 = vadd.s32 %v154_v41, %v150_v29  ;;  %v182_v49 = vadd.s32 %v176_v51, %v172_v35  ;;  %v279_v60 = vshrl.u32 %v893_v47, %v963_v61 }
  0x3c   :  { %v159_v59 = vsel %vm158_vm7, 1, %v895_v58  ;;  %v181_v50 = vsel %vm180_vm8, 1, %v895_v58  ;;  %v281_v63 = vshll.u32 %v893_v47, %v948_v37  ;;  %v277_v45 = vor.u32 %v276_v33, %v275_v28 }
  0x3d   :  { %v161_v62 = vadd.s32 %v159_v59, %v153_v34  ;;  %vm162_vm9 = vc.u32 %v160_v43, %v156_v44  ;;  %v183_v1 = vadd.s32 %v181_v50, %v175_v46  ;;  %vm184_vm10 = vc.u32 %v182_v49, %v178_v53 }
  0x3e   :  { %v163_v0 = vsel %vm162_vm9, 1, %v895_v58  ;;  %v185_v4 = vsel %vm184_vm10, 1, %v895_v58  ;;  %v280_v5 = vor.u32 %v279_v60, %v278_v57  ;;  %v282_v6 = vshrl.u32 %v894_v56, %v963_v61 }
  0x3f   :  { %v165_v3 = vadd.s32 %v163_v0, %v161_v62  ;;  %v1016_v7 = vadd.s32 %v182_v49, %v178_v53  ;;  %v187_v8 = vadd.s32 %v185_v4, %v183_v1  ;;  %vm284_vm11 = vcmp.lt.s32.totalorder %v993_v19, 1 }
  0x40   :  { %vm286_vm12 = vcmp.lt.s32.totalorder %v993_v19, 3  ;;  %v283_v47 = vor.u32 %v282_v6, %v281_v63  ;;  %vm285_vm13 = vcmp.lt.s32.totalorder %v993_v19, 2  ;;  %vm287_vm14 = vcmp.lt.s32.totalorder %v993_v19, 4 }
  0x41   :  { %v166_v37 = vadd.s32 %v165_v3, %v155_v42  ;;  %v136_v9 = vsel %vm130_vm6, %v133_v13, %v135_v25  ;;  %v188_v10 = vadd.s32 %v187_v8, %v177_v52  ;;  %v292_v56 = vsel %vm284_vm11, %v997_v26, %v999_v27 }
  0x42   :  { %v293_v11 = vsel %vm287_vm14, %v280_v5, 920167782  ;;  %v296_v15 = vsel %vm284_vm11, %v999_v27, %v277_v45  ;;  %v297_v20 = vsel %vm287_vm14, %v283_v47, 1326507024  ;;  %v301_v21 = vand.u32 65535, %v956_v54 }
  0x43   :  { %v1030_v12 = vadd.s32 %v166_v37, %v157_v48  ;;  %v294_v14 = vsel %vm286_vm12, %v277_v45, %v293_v11  ;;  %v189_v36 = vadd.s32 %v188_v10, %v179_v55  ;;  %v190_v22 = vmul.u32 %v944_v32, %v136_v9 }
  0x44   :  { %v295_v13 = vsel %vm285_vm13, %v292_v56, %v294_v14  ;;  %v298_v23 = vsel %vm286_vm12, %v280_v5, %v297_v20  ;;  %v302_v25 = vshrl.u32 %v956_v54, 16  ;;  %v268_v48 = vshrl.u32 %v889_v39, %v963_v61 }
  0x45   :  { %vm192_vm15 = vc.u32 %v1030_v12, %v1016_v7  ;;  %v193_v28 = vadd.s32 1, %v189_v36  ;;  %v299_v29 = vsel %vm285_vm13, %v296_v15, %v298_v23  ;;  %v325_v30 = vand.u32 65535, %v295_v13 }
  0x46   :  { %v326_v31 = vshrl.u32 %v295_v13, 16  ;;  %v303_v33 = vand.u32 65535, %v299_v29  ;;  %v304_v34 = vshrl.u32 %v299_v29, 16  ;;  %v289_v59 = vsel %vm287_vm14, %v277_v45, 2102212464 }
  0x47   :  { %v194_v35 = vsel %vm192_vm15, %v193_v28, %v189_v36  ;;  %v327_v38 = vmul.u32 %v325_v30, %v301_v21  ;;  %v329_v32 = vmul.u32 %v325_v30, %v302_v25  ;;  %v288_v39 = vsel %vm284_vm11, %v268_v48, %v997_v26 }
  0x48   :  { %v328_v40 = vmul.u32 %v326_v31, %v301_v21  ;;  %v195_v41 = vadd.s32 %v194_v35, %v190_v22  ;;  %v305_v42 = vmul.u32 %v303_v33, %v301_v21  ;;  %v306_v44 = vmul.u32 %v304_v34, %v301_v21 }
  0x49   :  { %v307_v46 = vmul.u32 %v303_v33, %v302_v25  ;;  %v330_v51 = vmul.u32 %v326_v31, %v302_v25  ;;  %v308_v43 = vmul.u32 %v304_v34, %v302_v25  ;;  %v333_v49 = vshll.u32 %v329_v32, 16 }
  0x4a   :  { %v331_v52 = vshll.u32 %v328_v40, 16  ;;  %v196_v53 = vadd.s32 536870912, %v195_v41  ;;  %v309_v55 = vshll.u32 %v306_v44, 16  ;;  %v310_v3 = vshrl.u32 %v306_v44, 16 }
  0x4b   :  { %v311_v57 = vshll.u32 %v307_v46, 16  ;;  %v290_v4 = vsel %vm286_vm12, %v999_v27, %v289_v59  ;;  %v332_v6 = vshrl.u32 %v328_v40, 16  ;;  %v312_v37 = vshrl.u32 %v307_v46, 16 }
  0x4c   :  { %vm335_vm0 = vc.u32 %v327_v38, %v331_v52  ;;  %v1054_v60 = vshrl.u32 %v196_v53, 30  ;;  %vm313_vm1 = vc.u32 %v305_v42, %v309_v55  ;;  %v315_v62 = vadd.s32 %v309_v55, %v305_v42 }
  0x4d   :  { %v336_v50 = vsel %vm335_vm0, 1, %v895_v58  ;;  %v314_v61 = vsel %vm313_vm1, 1, %v895_v58  ;;  %v337_v63 = vadd.s32 %v331_v52, %v327_v38  ;;  %v334_v9 = vshrl.u32 %v329_v32, 16 }
  0x4e   :  { %v338_v0 = vadd.s32 %v336_v50, %v330_v51  ;;  %v198_v1 = vshll.u32 %v1054_v60, 30  ;;  %v316_v45 = vadd.s32 %v314_v61, %v308_v43  ;;  %vm317_vm2 = vc.u32 %v315_v62, %v311_v57 }
  0x4f   :  { %v318_v5 = vsel %vm317_vm2, 1, %v895_v58  ;;  %vm339_vm3 = vc.u32 %v337_v63, %v333_v49  ;;  %v341_v14 = vadd.s32 %v337_v63, %v333_v49  ;;  %v291_v15 = vsel %vm285_vm13, %v288_v39, %v290_v4 }
  0x50   :  { %v199_v8 = vsub.s32 %v195_v41, %v198_v1  ;;  %v320_v26 = vadd.s32 %v318_v5, %v316_v45  ;;  %v340_v47 = vsel %vm339_vm3, 1, %v895_v58  ;;  %v345_v22 = vmul.u32 %v956_v54, %v291_v15 }
  0x51   :  { %v342_v10 = vadd.s32 %v340_v47, %v338_v0  ;;  %v191_v58 = vadd.s32 %v1016_v7, %v1030_v12  ;;  %vm99_vm8 = vcmp.lt.s32.totalorder %v932_v16, 0  ;;  %vm1075_vm9 = vcmp.le.f32.partialorder %v97_v18, 0.7853982 }
  0x52   :  { %vm200_vm4 = vcmp.lt.s32.totalorder %v199_v8, 0  ;;  %v201_v56 = vsub.s32 0, %v199_v8  ;;  %v321_v11 = vadd.s32 %v320_v26, %v310_v3  ;;  %vm254_vm11 = vcmp.lt.s32.totalorder %v934_v17, 0 }
  0x53   :  { %v343_v36 = vadd.s32 %v342_v10, %v332_v6  ;;  %vm253_vm12 = vcmp.le.f32.partialorder %v252_v24, 0.7853982  ;;  %vm240_vm3 = vweird.f32 %v932_v16 }
  0x54   :  { %v202_v27 = vsel %vm200_vm4, %v201_v56, %v199_v8  ;;  %v322_v13 = vadd.s32 %v321_v11, %v312_v37 }
  0x55   :  { %v203_v20 = vclz %v202_v27  ;;  %v344_v21 = vadd.s32 %v343_v36, %v334_v9 }
  0x56   :  { %vm347_vm5 = vc.u32 %v322_v13, %v341_v14  ;;  %v346_v62 = vadd.s32 %v341_v14, %v322_v13 }
  0x57   :  { %v777_v23 = vadd.s32 4294967294, %v203_v20  ;;  %v348_v25 = vadd.s32 1, %v344_v21 }
  0x59   :  { %vm778_vm6 = vcmp.lt.s32.totalorder %v777_v23, 0  ;;  %v349_v28 = vsel %vm347_vm5, %v348_v25, %v344_v21 }
  0x5a   :  { %v206_v29 = vsel %vm778_vm6, 0, %v777_v23  ;;  %v350_v30 = vadd.s32 %v349_v28, %v345_v22 }
  0x5b   :  { %v207_v31 = vsub.s32 32, %v206_v29  ;;  %v208_v19 = vshll.u32 %v199_v8, %v206_v29  ;;  %v211_v33 = vsub.s32 4294967266, %v206_v29  ;;  %v221_v8 = vsub.s32 4, %v1054_v60 }
  0x5c   :  { %v351_v34 = vadd.s32 536870912, %v350_v30 }
  0x5d   :  { %v209_v35 = vshrl.u32 %v191_v58, %v207_v31  ;;  %v212_v38 = vadd.s32 127, %v211_v33  ;;  %v222_v56 = vsel %vm99_vm8, %v221_v8, %v1054_v60  ;;  %v804_v8 = vld [vmem:[%s1116_s2] ss:$0 sm:$0xff] }
  0x5e   :  { %v352_v40 = vshrl.u32 %v351_v34, 30  ;;  %v224_v27 = vsel %vm1075_vm9, 0, %v222_v56 }
  0x5f   :  { %v210_v32 = vor.u32 %v209_v35, %v208_v19  ;;  %v213_v41 = vshll.u32 %v212_v38, 23  ;;  %v241_v23 = vadd.s32 3, %v224_v27  ;;  %v551_v35 = vand.u32 3, %v224_v27 }
  0x60   :  { %v353_v54 = vshll.u32 %v352_v40, 30  ;;  %v376_v13 = vsub.s32 4, %v352_v40 }
  0x61   :  { %v214_v42 = vor.u32 4788187, %v213_v41  ;;  %v217_v44 = vcvt.s32.f32 %v210_v32  ;;  %v242_v31 = vand.u32 3, %v241_v23  ;;  %vm553_vm15 = vcmp.eq.s32.totalorder %v551_v35, 0 }
  0x62   :  { %v354_v46 = vsub.s32 %v350_v30, %v353_v54  ;;  %v377_v58 = vsel %vm254_vm11, %v376_v13, %v352_v40  ;;  %v95_v40 = vand.u32 1, %v929_v2  ;;  %vm556_vm0 = vcmp.eq.s32.totalorder %v551_v35, 2 }
  0x63   :  { %v215_v48 = vand.u32 2147483647, %v214_v42  ;;  %v379_v19 = vsel %vm253_vm12, 0, %v377_v58  ;;  %vm244_vm13 = vcmp.eq.s32.totalorder %v242_v31, 0  ;;  %vm247_vm14 = vcmp.eq.s32.totalorder %v242_v31, 2 }
  0x64   :  { %vm355_vm7 = vcmp.lt.s32.totalorder %v354_v46, 0  ;;  %v356_v7 = vsub.s32 0, %v354_v46  ;;  %v396_v54 = vadd.s32 3, %v379_v19  ;;  %vm243_vm1 = vcmp.lt.s32.totalorder %v242_v31, 2 }
  0x65   :  { %v218_v12 = vmul.f32 %v217_v44, %v215_v48  ;;  %vm552_vm2 = vcmp.lt.s32.totalorder %v551_v35, 2  ;;  %v705_v52 = vand.u32 3, %v379_v19  ;;  %vm1096_vm6 = vcmp.eq.s32.totalorder %v95_v40, 0 }
  0x66   :  { %v357_v51 = vsel %vm355_vm7, %v356_v7, %v354_v46 }
  0x67   :  { %v219_v53 = vxor.u32 2147483648, %v218_v12  ;;  %v358_v43 = vclz %v357_v51  ;;  %v397_v51 = vand.u32 3, %v396_v54  ;;  %vm710_vm5 = vcmp.eq.s32.totalorder %v705_v52, 2 }
  0x69   :  { %v220_v55 = vsel %vm99_vm8, %v219_v53, %v218_v12  ;;  %v780_v57 = vadd.s32 4294967294, %v358_v43  ;;  %vm402_vm4 = vcmp.eq.s32.totalorder %v397_v51, 2  ;;  %vm398_vm7 = vcmp.lt.s32.totalorder %v397_v51, 2 }
  0x6a   :  { %v223_v59 = vsel %vm1075_vm9, %v932_v16, %v220_v55  ;;  %vm399_vm8 = vcmp.eq.s32.totalorder %v397_v51, 0  ;;  %vm706_vm9 = vcmp.lt.s32.totalorder %v705_v52, 2 }
  0x6b   :  { %v225_v49 = vmul.f32 %v223_v59, %v223_v59  ;;  %vm781_vm10 = vcmp.lt.s32.totalorder %v780_v57, 0 }
  0x6c   :  { %v361_v50 = vsel %vm781_vm10, 0, %v780_v57  ;;  %vm707_vm10 = vcmp.eq.s32.totalorder %v705_v52, 0 }
  0x6d   :  { %v226_v39 = vmul.f32 -0.001358992, %v225_v49  ;;  %v233_v61 = vmul.f32 -0.00019511016, %v225_v49  ;;  %v362_v18 = vsub.s32 32, %v361_v50  ;;  %v363_v63 = vshll.u32 %v354_v46, %v361_v50 }
  0x6e   :  { %v366_v0 = vsub.s32 4294967266, %v361_v50 }
  0x6f   :  { %v227_v1 = vadd.f32 0.041655596, %v226_v39  ;;  %v234_v3 = vadd.f32 0.008332121, %v233_v61  ;;  %v364_v45 = vshrl.u32 %v346_v62, %v362_v18 }
  0x70   :  { %v367_v4 = vadd.s32 127, %v366_v0 }
  0x71   :  { %v235_v5 = vmul.f32 %v234_v3, %v225_v49  ;;  %v365_v6 = vor.u32 %v364_v45, %v363_v63  ;;  %v228_v26 = vmul.f32 %v227_v1, %v225_v49 }
  0x72   :  { %v368_v37 = vshll.u32 %v367_v4, 23 }
  0x73   :  { %v236_v47 = vadd.f32 -0.16666654, %v235_v5  ;;  %v372_v10 = vcvt.s32.f32 %v365_v6  ;;  %v229_v14 = vadd.f32 -0.4999988, %v228_v26 }
  0x74   :  { %v369_v9 = vor.u32 4788187, %v368_v37 }
  0x75   :  { %v237_v15 = vmul.f32 %v236_v47, %v225_v49  ;;  %v230_v21 = vmul.f32 %v229_v14, %v225_v49 }
  0x76   :  { %v370_v11 = vand.u32 2147483647, %v369_v9 }
  0x77   :  { %v238_v22 = vadd.f32 1.0, %v237_v15  ;;  %v231_v29 = vadd.f32 1.0, %v230_v21 }
  0x78   :  { %v373_v36 = vmul.f32 %v372_v10, %v370_v11 }
  0x79   :  { %v239_v30 = vmul.f32 %v238_v22, %v223_v59  ;;  %v248_v24 = vxor.u32 2147483648, %v231_v29 }
  0x7a   :  { %v374_v20 = vxor.u32 2147483648, %v373_v36 }
  0x7b   :  { %v245_v41 = vxor.u32 2147483648, %v239_v30  ;;  %v249_v12 = vsel %vm247_vm14, %v248_v24, %v239_v30  ;;  %v558_v43 = vsel %vm556_vm0, %v248_v24, %v239_v30 }
  0x7c   :  { %v375_v25 = vsel %vm254_vm11, %v374_v20, %v373_v36  ;;  %vm395_vm11 = vweird.f32 %v934_v17 }
  0x7d   :  { %v378_v60 = vsel %vm253_vm12, %v934_v17, %v375_v25  ;;  %v246_v7 = vsel %vm244_vm13, %v231_v29, %v245_v41  ;;  %v555_v53 = vsel %vm553_vm15, %v231_v29, %v245_v41  ;;  %vm753_vm12 = vcmask 261120  }
  0x7e   :  { %v380_v28 = vmul.f32 %v378_v60, %v378_v60  ;;  %v250_v59 = vsel %vm243_vm1, %v246_v7, %v249_v12  ;;  %v559_v2 = vsel %vm552_vm2, %v555_v53, %v558_v43 }
  0x7f   :  { %v251_v18 = vsel %vm240_vm3, nan, %v250_v59  ;;  %v560_v63 = vsel %vm240_vm3, nan, %v559_v2 }
  0x80   :  { %v381_v33 = vmul.f32 -0.001358992, %v380_v28  ;;  %v388_v34 = vmul.f32 -0.00019511016, %v380_v28  ;;  %v715_v4 = vsel %vm1096_vm6, %v251_v18, %v560_v63 }
  0x82   :  { %v382_v38 = vadd.f32 0.041655596, %v381_v33  ;;  %v389_v32 = vadd.f32 0.008332121, %v388_v34 }
  0x84   :  { %v383_v42 = vmul.f32 %v382_v38, %v380_v28  ;;  %v390_v44 = vmul.f32 %v389_v32, %v380_v28 }
  0x86   :  { %v384_v46 = vadd.f32 -0.4999988, %v383_v42  ;;  %v391_v48 = vadd.f32 -0.16666654, %v390_v44 }
  0x88   :  { %v385_v55 = vmul.f32 %v384_v46, %v380_v28  ;;  %v392_v57 = vmul.f32 %v391_v48, %v380_v28 }
  0x8a   :  { %v386_v49 = vadd.f32 1.0, %v385_v55  ;;  %v393_v62 = vadd.f32 1.0, %v392_v57 }
  0x8c   :  { %v394_v39 = vmul.f32 %v393_v62, %v378_v60  ;;  %v403_v61 = vxor.u32 2147483648, %v386_v49 }
  0x8d   :  { %v741_v47 = vpop.f32.mrf.mxu0  ;;  %v744_v10 = vpop.f32.mrf.mxu1 }
  0x8e   :  { %v400_v0 = vxor.u32 2147483648, %v394_v39  ;;  %v404_v16 = vsel %vm402_vm4, %v403_v61, %v394_v39  ;;  %v712_v1 = vsel %vm710_vm5, %v403_v61, %v394_v39  ;;  %v742_v56 = vadd.f32 %v741_v47, %v715_v4 }
  0x90   :  { %v401_v3 = vsel %vm399_vm8, %v386_v49, %v400_v0  ;;  %v709_v45 = vsel %vm707_vm10, %v386_v49, %v400_v0  ;;  %v751_v11 = vadd.f32 %v804_v8, %v742_v56 }
  0x91   :  { %v405_v5 = vsel %vm398_vm7, %v401_v3, %v404_v16  ;;  %v713_v6 = vsel %vm706_vm9, %v709_v45, %v712_v1 }
  0x92   :  { %v406_v37 = vsel %vm395_vm11, nan, %v405_v5  ;;  %v714_v26 = vsel %vm395_vm11, nan, %v713_v6  ;;  %754 = vst.msk [vmem:[#allocation7] sm:$0xff] %vm753_vm12, %v751_v11 }
  0x93   :  { %v716_v9 = vsel %vm1096_vm6, %v406_v37, %v714_v26 }
  0x94   :  { %v745_v17 = vadd.f32 %v744_v10, %v716_v9 }
  0x96   :  { %v752_v14 = vadd.f32 %v804_v8, %v745_v17 }
  0x98   :  { %755 = vst.msk [vmem:[#allocation7 + $0x8] sm:$0xff] %vm753_vm12, %v752_v14 }
  0x99   :  { %768 = dma.vmem_to_hbm [thread:$0]  %s761_s25, 256, %s763_s28, [#allocation4], %s886_s20, %s886_s20, %s887_s21  }
  0x9a   :  { %883 = dma.done.wait [#allocation4], 256  }
  0x9b   :  { %884 = vsyncadd [#allocation4], 4294967040 }
  0x9c   :  { %773 = vsyncpa [#allocation3], 1 }
  0x9d   :  { %774 = vsyncpa [#allocation6], 1 }
  0x9e   :  { %775 = vsyncpa [#allocation4], 1 }

</bundles_post_ra>
